<compile_context>
chip_gen: v6e
topology: v6e:2x2x1
jax: 0.10.0
libtpu: 0.0.40
codegen_flags: <defaults>
</compile_context>

<pallas_src>
import functools

import jax
import jax.numpy as jnp
from jax.experimental import pallas as pl
from jax.experimental.pallas import tpu as pltpu


def mine_mlp_kernel(prefix_ref, domain_ref, w1p_ref, w1d_ref, b1_ref,
                    w2_ref, b2_ref, w3_ref, b3_ref, o_ref):
    """(Linear -> ReLU) x2 -> Linear on one batch tile of tb rows."""
    # Layer 1: fused "concat([prefix, domain]) @ W1" as two bf16 MXU matmuls
    # with f32 accumulation.
    px = prefix_ref[...].astype(jnp.bfloat16)                         # [tb, P]
    dm = domain_ref[...].astype(jnp.bfloat16)                         # [tb, DD]
    h1 = jnp.dot(px, w1p_ref[...], preferred_element_type=jnp.float32)
    h1 = h1 + jnp.dot(dm, w1d_ref[...], preferred_element_type=jnp.float32)
    h1 = jnp.maximum(h1 + b1_ref[...], 0.0)                           # [tb, H]

    # Layer 2: bf16 MXU matmul, f32 accumulation.
    h2 = jnp.dot(h1.astype(jnp.bfloat16), w2_ref[...],
                 preferred_element_type=jnp.float32)
    h2 = jnp.maximum(h2 + b2_ref[...], 0.0)                           # [tb, H]

    # Layer 3 (out_features == 1): VPU multiply + lane reduction instead of a
    # wasteful N=1 MXU matmul; store lane-dense as a (1, 1, tb) row.
    out = jnp.sum(h2 * w3_ref[...], axis=-1)                          # [tb]
    o_ref[...] = (out[None, None, :] + b3_ref[...]).astype(o_ref.dtype)


def _round_up(x, m):
    return ((x + m - 1) // m) * m


def _pick_batch_tile(batch):
    """Batch tile: large enough to fill MXU rows and amortize per-step
    overhead, small enough that big batches still get >=2 grid steps so the
    'parallel' grid axis can use both v7x TensorCores."""
    if batch <= 512:
        return _round_up(batch, 8)     # single (possibly padded) tile
    if batch <= 4096:
        return 256                     # full 256-row MXU occupancy, >=3 steps
    return 512


@functools.partial(jax.jit, static_argnames=("tb",))
def _mine_forward_jit(prefix, domain, params, *, tb):
    w1p, w1d, b1, w2, b2, w3, b3 = params
    B, P = prefix.shape
    DD = domain.shape[1]
    H = w2.shape[0]
    nt = pl.cdiv(B, tb)

    const2 = lambda i: (0, 0)  # weights/biases never change across the grid

    out_slab = pl.pallas_call(
        mine_mlp_kernel,
        out_shape=jax.ShapeDtypeStruct((nt, 1, tb), jnp.float32),
        grid_spec=pltpu.PrefetchScalarGridSpec(
            num_scalar_prefetch=0,
            grid=(nt,),
            in_specs=[
                pl.BlockSpec((tb, P), lambda i: (i, 0)),    # prefix tile
                pl.BlockSpec((tb, DD), lambda i: (i, 0)),   # domain one-hot tile
                pl.BlockSpec((P, H), const2),               # W1 (prefix rows)
                pl.BlockSpec((DD, H), const2),              # W1 (domain rows)
                pl.BlockSpec((1, H), const2),               # b1
                pl.BlockSpec((H, H), const2),               # W2
                pl.BlockSpec((1, H), const2),               # b2
                pl.BlockSpec((1, H), const2),               # W3 as a row
                pl.BlockSpec((1, 1), const2),               # b3
            ],
            out_specs=pl.BlockSpec((1, 1, tb), lambda i: (i, 0, 0)),
        ),
        compiler_params=pltpu.CompilerParams(
            dimension_semantics=("parallel",),
            vmem_limit_bytes=32 * 1024 * 1024,
        ),
    )(prefix, domain, w1p, w1d, b1, w2, b2, w3, b3)

    # Lane-dense slab (nt, 1, tb) -> (B, 1); padded tail rows are discarded.
    return out_slab.reshape(nt * tb, 1)[:B]


def mine_forward(prefix, domain_onehot, params, *, tb=None):
    """prefix: [B, prefix_dim] f32, domain_onehot: [B, domain_dim] f32."""
    if tb is None:
        tb = _pick_batch_tile(prefix.shape[0])
    return _mine_forward_jit(prefix, domain_onehot, params, tb=tb)


def init_mine_params(key, prefix_dim, domain_dim, hidden_dim=256):
    """nn.Linear-matching init.  Weights are stored pre-transposed [in, out];
    the MXU weights are kept in bf16, biases and the final row in f32."""
    d_in = prefix_dim + domain_dim
    ks = jax.random.split(key, 6)

    def lin(kw, kb, fan_in, fan_out):
        bound = 1.0 / (fan_in ** 0.5)
        w = jax.random.uniform(kw, (fan_in, fan_out), jnp.float32, -bound, bound)
        b = jax.random.uniform(kb, (1, fan_out), jnp.float32, -bound, bound)
        return w, b

    w1, b1 = lin(ks[0], ks[1], d_in, hidden_dim)
    w2, b2 = lin(ks[2], ks[3], hidden_dim, hidden_dim)
    w3, b3 = lin(ks[4], ks[5], hidden_dim, 1)

    return (w1[:prefix_dim].astype(jnp.bfloat16),   # W1 prefix slice
            w1[prefix_dim:].astype(jnp.bfloat16),   # W1 domain slice
            b1,
            w2.astype(jnp.bfloat16),
            b2,
            w3.T,                                   # (1, hidden) row, f32
            b3)                                     # (1, 1), f32


def mine_network(prefix, domain, params, *, num_classes=None):
    """Full MINENetwork.forward. One-hot glue stays in plain JAX."""
    if domain.ndim == 1:
        # TODO(synk): PyTorch uses num_classes = domain.max() + 1 (data
        # dependent); JAX needs a static class count, so it is passed here.
        domain = jax.nn.one_hot(domain, num_classes, dtype=jnp.float32)
    return mine_forward(prefix.astype(jnp.float32),
                        domain.astype(jnp.float32), params)


def reference_forward(prefix, domain_onehot, params):
    """Plain-JAX f32 reference using the same (bf16-rounded) weight values."""
    w1p, w1d, b1, w2, b2, w3, b3 = params
    x = jnp.concatenate([prefix, domain_onehot], axis=1).astype(jnp.float32)
    w1 = jnp.concatenate([w1p, w1d], axis=0).astype(jnp.float32)
    h1 = jnp.maximum(x @ w1 + b1, 0.0)
    h2 = jnp.maximum(h1 @ w2.astype(jnp.float32) + b2, 0.0)
    return h2 @ w3.astype(jnp.float32).T + b3


if __name__ == "__main__":
    key = jax.random.PRNGKey(0)
    kx, kd, kp = jax.random.split(key, 3)

    batch = 8
    prefix_dim = 16
    num_domains = 4        # domain one-hot width
    hidden_dim = 256       # module default; multiple of 256 -> full MXU tiles

    prefix = jax.random.normal(kx, (batch, prefix_dim), dtype=jnp.float32)
    domain = jax.random.randint(kd, (batch,), 0, num_domains)  # 1-D int labels

    params = init_mine_params(kp, prefix_dim, num_domains, hidden_dim)

    out = mine_network(prefix, domain, params, num_classes=num_domains)
    out = jax.block_until_ready(out)

    # Correctness check against a plain-JAX f32 reference (bf16 matmul inputs
    # inside the kernel -> relaxed tolerance).
    domain_oh = jax.nn.one_hot(domain, num_domains, dtype=jnp.float32)
    ref = reference_forward(prefix, domain_oh, params)
    assert out.shape == (batch, 1)
    assert jnp.allclose(out, ref, atol=1e-2, rtol=1e-2), (
        "max abs err = %g" % float(jnp.max(jnp.abs(out - ref))))

    print("KERNEL_OK")
</pallas_src>

<mosaic_0001>
module attributes {stable_mosaic.version = 11 : i64} {
  func.func @mine_mlp_kernel(%arg0: i32, %arg1: memref<8x16xf32, #tpu.memory_space<vmem>>, %arg2: memref<8x4xf32, #tpu.memory_space<vmem>>, %arg3: memref<16x256xbf16, #tpu.memory_space<vmem>>, %arg4: memref<4x256xbf16, #tpu.memory_space<vmem>>, %arg5: memref<1x256xf32, #tpu.memory_space<vmem>>, %arg6: memref<256x256xbf16, #tpu.memory_space<vmem>>, %arg7: memref<1x256xf32, #tpu.memory_space<vmem>>, %arg8: memref<1x256xf32, #tpu.memory_space<vmem>>, %arg9: memref<1x1xf32, #tpu.memory_space<vmem>>, %arg10: memref<1x1x8xf32, #tpu.memory_space<vmem>>) attributes {dimension_semantics = [#tpu.dimension_semantics<parallel>], iteration_bounds = array<i64: 1>, scalar_prefetch = 0 : i64, scratch_operands = 0 : i64, tpu.core_type = #tpu.core_type<tc>, window_params = [{transform_indices = @transform_0, window_bounds = array<i64: 8, 16>}, {transform_indices = @transform_1, window_bounds = array<i64: 8, 4>}, {pipeline_mode = #tpu.pipeline_mode<synchronous>, transform_indices = @transform_2, window_bounds = array<i64: 16, 256>}, {pipeline_mode = #tpu.pipeline_mode<synchronous>, transform_indices = @transform_3, window_bounds = array<i64: 4, 256>}, {pipeline_mode = #tpu.pipeline_mode<synchronous>, transform_indices = @transform_4, window_bounds = array<i64: 1, 256>}, {pipeline_mode = #tpu.pipeline_mode<synchronous>, transform_indices = @transform_5, window_bounds = array<i64: 256, 256>}, {pipeline_mode = #tpu.pipeline_mode<synchronous>, transform_indices = @transform_6, window_bounds = array<i64: 1, 256>}, {pipeline_mode = #tpu.pipeline_mode<synchronous>, transform_indices = @transform_7, window_bounds = array<i64: 1, 256>}, {pipeline_mode = #tpu.pipeline_mode<synchronous>, transform_indices = @transform_8, window_bounds = array<i64: 1, 1>}, {transform_indices = @transform_9, window_bounds = array<i64: 1, 1, 8>}]} {
    %c0 = arith.constant 0 : index
    %c0_0 = arith.constant 0 : index
    %0 = vector.load %arg1[%c0, %c0_0] : memref<8x16xf32, #tpu.memory_space<vmem>>, vector<8x16xf32>
    %1 = arith.truncf %0 : vector<8x16xf32> to vector<8x16xbf16>
    %c0_1 = arith.constant 0 : index
    %c0_2 = arith.constant 0 : index
    %2 = vector.load %arg2[%c0_1, %c0_2] : memref<8x4xf32, #tpu.memory_space<vmem>>, vector<8x4xf32>
    %3 = arith.truncf %2 : vector<8x4xf32> to vector<8x4xbf16>
    %c0_3 = arith.constant 0 : index
    %c0_4 = arith.constant 0 : index
    %4 = vector.load %arg3[%c0_3, %c0_4] : memref<16x256xbf16, #tpu.memory_space<vmem>>, vector<16x256xbf16>
    %cst = arith.constant dense<0.000000e+00> : vector<8x256xf32>
    %5 = tpu.matmul %1, %4, %cst {dimension_numbers = #tpu.dot_dimension_numbers<[1], [0], [0], [1], [0, 0, 1, 1], [], []>} : vector<8x16xbf16>, vector<16x256xbf16>, vector<8x256xf32> -> vector<8x256xf32>
    %c0_5 = arith.constant 0 : index
    %c0_6 = arith.constant 0 : index
    %6 = vector.load %arg4[%c0_5, %c0_6] : memref<4x256xbf16, #tpu.memory_space<vmem>>, vector<4x256xbf16>
    %cst_7 = arith.constant dense<0.000000e+00> : vector<8x256xf32>
    %7 = tpu.matmul %3, %6, %cst_7 {dimension_numbers = #tpu.dot_dimension_numbers<[1], [0], [0], [1], [0, 0, 1, 1], [], []>} : vector<8x4xbf16>, vector<4x256xbf16>, vector<8x256xf32> -> vector<8x256xf32>
    %8 = arith.addf %5, %7 : vector<8x256xf32>
    %c0_8 = arith.constant 0 : index
    %c0_9 = arith.constant 0 : index
    %9 = vector.load %arg5[%c0_8, %c0_9] : memref<1x256xf32, #tpu.memory_space<vmem>>, vector<1x256xf32>
    %10 = vector.broadcast %9 : vector<1x256xf32> to vector<8x256xf32>
    %11 = arith.addf %8, %10 : vector<8x256xf32>
    %cst_10 = arith.constant 0.000000e+00 : f32
    %12 = vector.broadcast %cst_10 : f32 to vector<8x256xf32>
    %13 = arith.maximumf %11, %12 : vector<8x256xf32>
    %14 = arith.truncf %13 : vector<8x256xf32> to vector<8x256xbf16>
    %c0_11 = arith.constant 0 : index
    %c0_12 = arith.constant 0 : index
    %15 = vector.load %arg6[%c0_11, %c0_12] : memref<256x256xbf16, #tpu.memory_space<vmem>>, vector<256x256xbf16>
    %cst_13 = arith.constant dense<0.000000e+00> : vector<8x256xf32>
    %16 = tpu.matmul %14, %15, %cst_13 {dimension_numbers = #tpu.dot_dimension_numbers<[1], [0], [0], [1], [0, 0, 1, 1], [], []>} : vector<8x256xbf16>, vector<256x256xbf16>, vector<8x256xf32> -> vector<8x256xf32>
    %c0_14 = arith.constant 0 : index
    %c0_15 = arith.constant 0 : index
    %17 = vector.load %arg7[%c0_14, %c0_15] : memref<1x256xf32, #tpu.memory_space<vmem>>, vector<1x256xf32>
    %18 = vector.broadcast %17 : vector<1x256xf32> to vector<8x256xf32>
    %19 = arith.addf %16, %18 : vector<8x256xf32>
    %cst_16 = arith.constant 0.000000e+00 : f32
    %20 = vector.broadcast %cst_16 : f32 to vector<8x256xf32>
    %21 = arith.maximumf %19, %20 : vector<8x256xf32>
    %c0_17 = arith.constant 0 : index
    %c0_18 = arith.constant 0 : index
    %22 = vector.load %arg8[%c0_17, %c0_18] : memref<1x256xf32, #tpu.memory_space<vmem>>, vector<1x256xf32>
    %23 = vector.broadcast %22 : vector<1x256xf32> to vector<8x256xf32>
    %24 = arith.mulf %21, %23 : vector<8x256xf32>
    %cst_19 = arith.constant dense<0.000000e+00> : vector<8xf32>
    %25 = vector.multi_reduction <add>, %24, %cst_19 [1] : vector<8x256xf32> to vector<8xf32>
    %26 = vector.shape_cast %25 : vector<8xf32> to vector<1x1x8xf32>
    %c0_20 = arith.constant 0 : index
    %c0_21 = arith.constant 0 : index
    %27 = vector.load %arg9[%c0_20, %c0_21] : memref<1x1xf32, #tpu.memory_space<vmem>>, vector<1x1xf32>
    %28 = vector.shape_cast %27 : vector<1x1xf32> to vector<1x1x1xf32>
    %29 = vector.broadcast %28 : vector<1x1x1xf32> to vector<1x1x8xf32>
    %30 = arith.addf %26, %29 : vector<1x1x8xf32>
    %c0_22 = arith.constant 0 : index
    %c0_23 = arith.constant 0 : index
    %c0_24 = arith.constant 0 : index
    %31 = vector.load %arg10[%c0_22, %c0_23, %c0_24] : memref<1x1x8xf32, #tpu.memory_space<vmem>>, vector<1x1x8xf32>
    tpu.vector_store %arg10[%c0_22, %c0_23, %c0_24], %30 {strides = array<i32>} : memref<1x1x8xf32, #tpu.memory_space<vmem>>, vector<1x1x8xf32>,
    return
  }
  func.func @transform_0(%arg0: i32) -> (i32, i32) {
    %c0_i32 = arith.constant 0 : i32
    %c0_i32_0 = arith.constant 0 : i32
    return %arg0, %c0_i32 : i32, i32
  }
  func.func @transform_1(%arg0: i32) -> (i32, i32) {
    %c0_i32 = arith.constant 0 : i32
    %c0_i32_0 = arith.constant 0 : i32
    return %arg0, %c0_i32 : i32, i32
  }
  func.func @transform_2(%arg0: i32) -> (i32, i32) {
    %c0_i32 = arith.constant 0 : i32
    %c0_i32_0 = arith.constant 0 : i32
    %c0_i32_1 = arith.constant 0 : i32
    return %c0_i32, %c0_i32_0 : i32, i32
  }
  func.func @transform_3(%arg0: i32) -> (i32, i32) {
    %c0_i32 = arith.constant 0 : i32
    %c0_i32_0 = arith.constant 0 : i32
    %c0_i32_1 = arith.constant 0 : i32
    return %c0_i32, %c0_i32_0 : i32, i32
  }
  func.func @transform_4(%arg0: i32) -> (i32, i32) {
    %c0_i32 = arith.constant 0 : i32
    %c0_i32_0 = arith.constant 0 : i32
    %c0_i32_1 = arith.constant 0 : i32
    return %c0_i32, %c0_i32_0 : i32, i32
  }
  func.func @transform_5(%arg0: i32) -> (i32, i32) {
    %c0_i32 = arith.constant 0 : i32
    %c0_i32_0 = arith.constant 0 : i32
    %c0_i32_1 = arith.constant 0 : i32
    return %c0_i32, %c0_i32_0 : i32, i32
  }
  func.func @transform_6(%arg0: i32) -> (i32, i32) {
    %c0_i32 = arith.constant 0 : i32
    %c0_i32_0 = arith.constant 0 : i32
    %c0_i32_1 = arith.constant 0 : i32
    return %c0_i32, %c0_i32_0 : i32, i32
  }
  func.func @transform_7(%arg0: i32) -> (i32, i32) {
    %c0_i32 = arith.constant 0 : i32
    %c0_i32_0 = arith.constant 0 : i32
    %c0_i32_1 = arith.constant 0 : i32
    return %c0_i32, %c0_i32_0 : i32, i32
  }
  func.func @transform_8(%arg0: i32) -> (i32, i32) {
    %c0_i32 = arith.constant 0 : i32
    %c0_i32_0 = arith.constant 0 : i32
    %c0_i32_1 = arith.constant 0 : i32
    return %c0_i32, %c0_i32_0 : i32, i32
  }
  func.func @transform_9(%arg0: i32) -> (i32, i32, i32) {
    %c0_i32 = arith.constant 0 : i32
    %c0_i32_0 = arith.constant 0 : i32
    %c0_i32_1 = arith.constant 0 : i32
    return %arg0, %c0_i32, %c0_i32_0 : i32, i32, i32
  }
}

</mosaic_0001>

<bundles_post_ra>
// kernel: _mine_forward_jit.1
= control target key start
LH: loop header
LB: loop body
LE: loop exit
PB: predicated region body
PF: predicated region fallthrough
CT: control target
= control target key end

     0   :  { %s788_s0 = inlined_call_operand.hbm [shape: f32[8,16], index: 0, kind: input, shape index: {}]   ;;  %s789_s1 = inlined_call_operand.vmem [shape: f32[8,4], index: 1, kind: input, shape index: {}]   ;;  %s790_s2 = inlined_call_operand.vmem [shape: bf16[16,256], index: 2, kind: input, shape index: {}]   ;;  %s791_s3 = inlined_call_operand.hbm [shape: bf16[4,256], index: 3, kind: input, shape index: {}]   ;;  %s792_s4 = inlined_call_operand.vmem [shape: f32[1,256], index: 4, kind: input, shape index: {}]   ;;  %s793_s5 = inlined_call_operand.hbm [shape: bf16[256,256], index: 5, kind: input, shape index: {}]   ;;  %s794_s6 = inlined_call_operand.vmem [shape: f32[1,256], index: 6, kind: input, shape index: {}]   ;;  %s795_s7 = inlined_call_operand.vmem [shape: f32[1,256], index: 7, kind: input, shape index: {}]   ;;  %s796_s8 = inlined_call_operand.<no memory space> [shape: f32[1,1], index: 8, kind: input, shape index: {}]   ;;  %s797_s9 = inlined_call_operand.hbm [shape: f32[1,1,8], index: 9, kind: output, shape index: {}]  }
   0x1   :  { %v14_v0 = vstv %s796_s8 }
   0x2   :  { %15 = vst [vmem:[#allocation2] sm:$0x1] %v14_v0 }
   0x3   :  { %16 = vsyncpa [#allocation4], 0 }
   0x4   :  { %17 = vsyncpa [#allocation7], 0 }
   0x5   :  { %18 = vsyncpa [#allocation5], 0  ;;  %s698_s11 = smov [#allocation6]   ;;  %s699_s13 = smov [#allocation3]  }
   0x6   :  { %s39_s12 = sshll.u32 %s698_s11, 4  ;;  %s25_s14 = sshll.u32 %s699_s13, 4  ;;  %s40_s12 = int_to_ptr.vmem [resolvable:$true] %s39_s12  ;;  %s26_s14 = int_to_ptr.vmem [resolvable:$true] %s25_s14 }
   0x7   :  { %s620_s15 = scalar_lea.vmem %s40_s12, 64  ;;  %p625_p1 = scmp.lt.s32.totalorder %s40_s12, %s40_s12 }
   0x8   :  { %p621_p0 = scmp.ne.s32.totalorder %s40_s12, %s620_s15  ;;  %p626_p2 = scmp.lt.s32.totalorder %s620_s15, %s620_s15 }
   0xa   :  { %p627_p3 = por %p626_p2, %p625_p1 }
   0xc   :  { %p628_p4 = pnand %p627_p3, %p621_p0 }
   0xe   :  { %631 = shalt.err (!%p628_p4)
}
   0xf   :  { %42 = dma.hbm_to_vmem [thread:$0]  %s791_s3, 64, %s40_s12, [#allocation7]  }
  0x10   :  { %s640_s8 = scalar_lea.vmem %s26_s14, 128  ;;  %p645_p6 = scmp.lt.s32.totalorder %s26_s14, %s26_s14 }
  0x11   :  { %p641_p5 = scmp.ne.s32.totalorder %s26_s14, %s640_s8  ;;  %p646_p7 = scmp.lt.s32.totalorder %s640_s8, %s640_s8 }
  0x13   :  { %p647_p8 = por %p646_p7, %p645_p6 }
  0x15   :  { %p648_p9 = pnand %p647_p8, %p641_p5 }
  0x17   :  { %651 = shalt.err (!%p648_p9)
}
  0x18   :  { %28 = dma.hbm_to_vmem [thread:$0]  %s788_s0, 128, %s26_s14, [#allocation4]  }
  0x19   :  { %s700_s20 = smov [#allocation8]  }
  0x1a   :  { %s50_s21 = sshll.u32 %s700_s20, 4  ;;  %s51_s21 = int_to_ptr.vmem [resolvable:$true] %s50_s21 }
  0x1b   :  { %s660_s22 = scalar_lea.vmem %s51_s21, 4096  ;;  %p665_p11 = scmp.lt.s32.totalorder %s51_s21, %s51_s21 }
  0x1c   :  { %p661_p10 = scmp.ne.s32.totalorder %s51_s21, %s660_s22  ;;  %p666_p12 = scmp.lt.s32.totalorder %s660_s22, %s660_s22 }
  0x1e   :  { %p667_p13 = por %p666_p12, %p665_p11 }
  0x20   :  { %p668_p0 = pnand %p667_p13, %p661_p10 }
  0x22   :  { %671 = shalt.err (!%p668_p0)
}
  0x23   :  { %s701_s3 = smov 128   ;;  %s702_s23 = smov 8  }
  0x24   :  { %56 = dma.hbm_to_vmem [thread:$0]  %s793_s5, 4096, %s51_s21, [#allocation7], %s701_s3, %s701_s3, %s702_s23  }
  0x25   :  { %692 = dma.done.wait [#allocation4], 128  }
  0x26   :  { %693 = vsyncadd [#allocation4], 4294967168 }
  0x27   :  { %694 = dma.done.wait [#allocation7], 4160  }
  0x28   :  { %695 = vsyncadd [#allocation7], 4294963136  ;;  %v703_v1 = vmov 0   ;;  %vm93_vm0 = vcmask 1041408   ;;  %v75_v3 = vld [vmem:[%s789_s1] sm:$0xff]  ;;  %vm89_vm1 = vcmask 31744   ;;  %v198_v43 = vlaneseq }
  0x29   :  { %132 = vmatprep.mubr.bf16.mxu1 %v703_v1  ;;  %560 = vset.pattern.permute.xlu0 %v703_v1  ;;  %v515_v2 = vld.sshfl [vmem:[#allocation6] sm:$0x33 pattern:$0x76325410]  ;;  %v76_v7 = vpack.c.bf16 %v75_v3, %v75_v3  ;;  %v566_v9 = vld [vmem:[#allocation8 + $0x70] ss:$8 sps:$4 sm:$0xff]  }
  0x2a   :  { %v88_v4 = vcombine.high %v515_v2, %v515_v2  ;;  %v95_v5 = vsel %vm93_vm0, %v515_v2, 0  ;;  %v563_v6 = vld [vmem:[%s790_s2 + $0x4] ss:$8 sps:$4 sm:$0xff]   ;;  %v561_v10 = vld [vmem:[%s790_s2] ss:$8 sps:$4 sm:$0xff]   ;;  %vm151_vm2 = vcmask 130048  }
  0x2b   :  { %v564_v8 = vld [vmem:[#allocation8 + $0x74] ss:$8 sps:$4 sm:$0xff]   ;;  %v567_v11 = vld [vmem:[#allocation8 + $0x64] ss:$8 sps:$4 sm:$0xff]   ;;  %v569_v12 = vld [vmem:[#allocation8 + $0x60] ss:$8 sps:$4 sm:$0xff]  }
  0x2c   :  { %516 = vmatprep.subr.msk.bf16.mxu1 %vm93_vm0, %v88_v4  ;;  %418 = vmatprep.subr.bf16.mxu0 %v564_v8  ;;  %v570_v13 = vld [vmem:[#allocation8 + $0x54] ss:$8 sps:$4 sm:$0xff]   ;;  %v572_v15 = vld [vmem:[#allocation8 + $0x50] ss:$8 sps:$4 sm:$0xff]   ;;  %v573_v17 = vld [vmem:[#allocation8 + $0x44] ss:$8 sps:$4 sm:$0xff]  }
  0x2d   :  { %115 = vmatpush1.bf16.msra.mxu1 %v95_v5  ;;  %419 = vmatpush1.bf16.msra.mxu0 %v566_v9  ;;  %v73_v14 = vld [vmem:[#allocation3] sm:$0xff]  ;;  %v575_v18 = vld [vmem:[#allocation8 + $0x40] ss:$8 sps:$4 sm:$0xff]   ;;  %v579_v21 = vld [vmem:[#allocation8 + $0x24] ss:$8 sps:$4 sm:$0xff]   ;;  %v199_v44 = vshrl.u32 %v198_v43, 7 }
  0x2e   :  { %169 = vmatprep.subr.bf16.mxu1 %v563_v6  ;;  %420 = vmatprep.subr.bf16.mxu0 %v567_v11  ;;  %v74_v16 = vpack.c.bf16 %v73_v14, %v73_v14  ;;  %v576_v19 = vld [vmem:[#allocation8 + $0x34] ss:$8 sps:$4 sm:$0xff]   ;;  %v578_v20 = vld [vmem:[#allocation8 + $0x30] ss:$8 sps:$4 sm:$0xff]   ;;  %v581_v22 = vld [vmem:[#allocation8 + $0x20] ss:$8 sps:$4 sm:$0xff]  }
  0x2f   :  { %v582_v23 = vld [vmem:[#allocation8 + $0x14] ss:$8 sps:$4 sm:$0xff]   ;;  %v584_v24 = vld [vmem:[#allocation8 + $0x10] ss:$8 sps:$4 sm:$0xff]   ;;  %v585_v25 = vld [vmem:[#allocation8 + $0x4] ss:$8 sps:$4 sm:$0xff]  }
  0x30   :  { %517 = vmatmul.mubr.msk.bf16.vlgmr.msra.gmra.mxu1 %vm89_vm1, %v76_v7  ;;  %v587_v26 = vld [vmem:[#allocation8] ss:$8 sps:$4 sm:$0xff]   ;;  %v588_v27 = vld [vmem:[#allocation8 + $0xf4] ss:$8 sps:$4 sm:$0xff]   ;;  %v590_v28 = vld [vmem:[#allocation8 + $0xf0] ss:$8 sps:$4 sm:$0xff]  }
  0x31   :  { %170 = vmatpush1.bf16.msra.mxu1 %v561_v10  ;;  %187 = vmatprep.mubr.bf16.mxu1 %v703_v1  ;;  %v591_v29 = vld [vmem:[#allocation8 + $0xe4] ss:$8 sps:$4 sm:$0xff]   ;;  %v593_v30 = vld [vmem:[#allocation8 + $0xe0] ss:$8 sps:$4 sm:$0xff]   ;;  %v594_v31 = vld [vmem:[#allocation8 + $0xd4] ss:$8 sps:$4 sm:$0xff]  }
  0x32   :  { %421 = vmatpush1.bf16.msra.mxu0 %v569_v12  ;;  %v596_v32 = vld [vmem:[#allocation8 + $0xd0] ss:$8 sps:$4 sm:$0xff]   ;;  %v597_v33 = vld [vmem:[#allocation8 + $0xc4] ss:$8 sps:$4 sm:$0xff]   ;;  %v599_v34 = vld [vmem:[#allocation8 + $0xc0] ss:$8 sps:$4 sm:$0xff]  }
  0x33   :  { %422 = vmatprep.subr.bf16.mxu0 %v570_v13  ;;  %v600_v35 = vld [vmem:[#allocation8 + $0xb4] ss:$8 sps:$4 sm:$0xff]   ;;  %v602_v36 = vld [vmem:[#allocation8 + $0xb0] ss:$8 sps:$4 sm:$0xff]   ;;  %v603_v37 = vld [vmem:[#allocation8 + $0xa4] ss:$8 sps:$4 sm:$0xff]  }
  0x34   :  { %v605_v38 = vld [vmem:[#allocation8 + $0xa0] ss:$8 sps:$4 sm:$0xff]   ;;  %v606_v39 = vld [vmem:[#allocation8 + $0x94] ss:$8 sps:$4 sm:$0xff]   ;;  %v608_v40 = vld [vmem:[#allocation8 + $0x90] ss:$8 sps:$4 sm:$0xff]  }
  0x35   :  { %v609_v41 = vld [vmem:[#allocation8 + $0x84] ss:$8 sps:$4 sm:$0xff]   ;;  %v611_v42 = vld [vmem:[#allocation8 + $0x80] ss:$8 sps:$4 sm:$0xff]   ;;  %v200_v47 = vsub.s32 0, %v199_v44  ;;  %v204_v50 = vsub.s32 1, %v199_v44 }
  0x36   :  { %423 = vmatpush1.bf16.msra.mxu0 %v572_v15  ;;  %v196_v49 = vld [vmem:[%s792_s4] sm:$0x3]  ;;  %vm497_vm3 = vcmask 57344  }
  0x37   :  { %424 = vmatprep.subr.bf16.mxu0 %v573_v17  ;;  %v201_v52 = vrot.slane %v196_v49, %v200_v47  ;;  %v205_v55 = vrot.slane %v196_v49, %v204_v50  ;;  %v246_v2 = vld [vmem:[%s794_s6] sm:$0x3]  ;;  %s704_s6 = smov [#allocation9]  }
  0x38   :  { %520 = vmatmul.mubr.msk.bf16.vlgmr.msra.gmra.mxu1 %vm151_vm2, %v74_v16  ;;  %v251_v3 = vrot.slane %v246_v2, %v200_v47  ;;  %v255_v4 = vrot.slane %v246_v2, %v204_v50  ;;  %v461_v6 = vld [vmem:[%s795_s7] sm:$0x3]  ;;  %s505_s7 = sshll.u32 %s704_s6, 4  ;;  %s506_s7 = int_to_ptr.vmem [resolvable:$true] %s505_s7 }
  0x39   :  { %v466_v11 = vrot.slane %v461_v6, %v200_v47  ;;  %v470_v12 = vrot.slane %v461_v6, %v204_v50  ;;  %s672_s12 = scalar_lea.vmem %s506_s7, 16  ;;  %s676_s13 = scalar_lea.vmem %s506_s7, 32 }
  0x3a   :  { %425 = vmatpush1.bf16.msra.mxu0 %v575_v18  ;;  %p673_p1 = scmp.ne.s32.totalorder %s506_s7, %s672_s12  ;;  %p677_p2 = scmp.lt.s32.totalorder %s506_s7, %s506_s7 }
  0x3b   :  { %426 = vmatprep.subr.bf16.mxu0 %v576_v19  ;;  %v478_v19 = vld [vmem:[#allocation2] sm:$0x1]  ;;  %p678_p3 = scmp.lt.s32.totalorder %s676_s13, %s672_s12 }
  0x3d   :  { %p679_p4 = por %p678_p3, %p677_p2 }
  0x3e   :  { %427 = vmatpush1.bf16.msra.mxu0 %v578_v20 }
  0x3f   :  { %428 = vmatprep.subr.bf16.mxu0 %v579_v21  ;;  %v491_v21 = vand.u32 127, %v198_v43  ;;  %p680_p5 = pnand %p679_p4, %p673_p1 }
  0x42   :  { %429 = vmatpush1.bf16.msra.mxu0 %v581_v22 }
  0x43   :  { %430 = vmatprep.subr.bf16.mxu0 %v582_v23  ;;  %v494_v23 = vsub.s32 %v491_v21, %v199_v44 }
  0x46   :  { %431 = vmatpush1.bf16.msra.mxu0 %v584_v24 }
  0x47   :  { %432 = vmatprep.subr.bf16.mxu0 %v585_v25 }
  0x4a   :  { %433 = vmatpush1.bf16.msra.mxu0 %v587_v26 }
  0x4b   :  { %434 = vmatprep.subr.bf16.mxu0 %v588_v27 }
  0x4e   :  { %435 = vmatpush2.bf16.msra.mxu0 %v590_v28 }
  0x4f   :  { %436 = vmatprep.subr.bf16.mxu0 %v591_v29 }
  0x52   :  { %437 = vmatpush2.bf16.msra.mxu0 %v593_v30 }
  0x53   :  { %438 = vmatprep.subr.bf16.mxu0 %v594_v31 }
  0x56   :  { %439 = vmatpush2.bf16.msra.mxu0 %v596_v32 }
  0x57   :  { %440 = vmatprep.subr.bf16.mxu0 %v597_v33 }
  0x5a   :  { %441 = vmatpush2.bf16.msra.mxu0 %v599_v34 }
  0x5b   :  { %442 = vmatprep.subr.bf16.mxu0 %v600_v35 }
  0x5e   :  { %443 = vmatpush2.bf16.msra.mxu0 %v602_v36 }
  0x5f   :  { %444 = vmatprep.subr.bf16.mxu0 %v603_v37 }
  0x62   :  { %445 = vmatpush2.bf16.msra.mxu0 %v605_v38 }
  0x63   :  { %446 = vmatprep.subr.bf16.mxu0 %v606_v39 }
  0x66   :  { %447 = vmatpush2.bf16.msra.mxu0 %v608_v40 }
  0x67   :  { %448 = vmatprep.subr.bf16.mxu0 %v609_v41 }
  0x6a   :  { %449 = vmatpush2.bf16.msra.mxu0 %v611_v42 }
  0xf0   :  { %v134_v45 = vpop.f32.mrf.mxu1 }
  0xf2   :  { %v136_v46 = vpop.f32.mrf.mxu1 }
  0xf4   :  { %v138_v48 = vpop.f32.mrf.mxu1 }
  0xf6   :  { %v139_v51 = vpop.f32.mrf.mxu1 }
  0xf8   :  { %v189_v53 = vpop.f32.mrf.mxu1 }
  0xf9   :  { %v190_v54 = vadd.f32 %v189_v53, %v134_v45 }
  0xfa   :  { %v191_v56 = vpop.f32.mrf.mxu1 }
  0xfb   :  { %v208_v57 = vadd.f32 %v201_v52, %v190_v54  ;;  %v192_v58 = vadd.f32 %v191_v56, %v136_v46 }
  0xfc   :  { %v193_v59 = vpop.f32.mrf.mxu1 }
  0xfd   :  { %v209_v60 = vadd.f32 %v205_v55, %v192_v58  ;;  %v210_v61 = vmax.f32 %v208_v57, 0.0 }
  0xfe   :  { %v194_v62 = vpop.f32.mrf.mxu1 }
  0xff   :  { %v211_v63 = vmax.f32 %v209_v60, 0.0  ;;  %v212_v1 = vpack.c.bf16 %v210_v61, %v210_v61 }
 0x101   :  { %v213_v0 = vpack.c.bf16 %v211_v63, %v211_v63 }
 0x103   :  { %450 = vmatprep.mubr.bf16.mxu0 %v213_v0 }
 0x104   :  { %451 = vmatmul.mubr.bf16.vlgmr.msra.gmra.mxu0 %v212_v1 }
 0x1c4   :  { %v452_v5 = vpop.f32.mrf.mxu0 }
 0x1c5   :  { %v453_v7 = vadd.f32 %v452_v5, %v251_v3 }
 0x1c6   :  { %v454_v8 = vpop.f32.mrf.mxu0 }
 0x1c7   :  { %v459_v9 = vmax.f32 %v453_v7, 0.0  ;;  %v455_v10 = vadd.f32 %v454_v8, %v255_v4 }
 0x1c8   :  { %v456_v13 = vpop.f32.mrf.mxu0 }
 0x1c9   :  { %v460_v14 = vmax.f32 %v455_v10, 0.0  ;;  %v473_v16 = vmul.f32 %v466_v11, %v459_v9 }
 0x1ca   :  { %v457_v15 = vpop.f32.mrf.mxu0 }
 0x1cb   :  { %v474_v17 = vmul.f32 %v470_v12, %v460_v14 }
 0x1cd   :  { %v475_v18 = vadd.f32 %v474_v17, %v473_v16 }
 0x1cf   :  { %476 = vadd.xlane.f32.xlu0 %v475_v18 }
 0x1e5   :  { %481 = vperm.xlu0 %560, %v478_v19  }
 0x258   :  { %v477_v20 = vpop.xlane.xlu0 %476 }
 0x260   :  { %v482_v22 = vpop.permute.xlu0 %481 }
 0x261   :  { %v487_v24 = vrot.slane %v482_v22, %v200_v47 }
 0x263   :  { %v488_v25 = vadd.f32 %v487_v24, %v477_v20 }
 0x265   :  { %v495_v26 = vrot.slane %v488_v25, %v494_v23 }
 0x267   :  { %498 = vst.msk [vmem:[#allocation9] sm:$0x1] %vm497_vm3, %v495_v26 }
 0x268   :  { %683 = shalt.err (!%p680_p5)
}
 0x269   :  { %508 = dma.vmem_to_hbm [thread:$0]  %s506_s7, 16, %s797_s9, [#allocation5]  }
 0x26a   :  { %696 = dma.done.wait [#allocation5], 16  }
 0x26b   :  { %697 = vsyncadd [#allocation5], 4294967280 }
 0x26c   :  { %512 = vsyncpa [#allocation4], 1 }
 0x26d   :  { %513 = vsyncpa [#allocation7], 1 }
 0x26e   :  { %514 = vsyncpa [#allocation5], 1 }

</bundles_post_ra>
